<compile_context>
chip_gen: v7x
topology: tpu7x:2x2x1
jax: 0.10.0
libtpu: 0.0.40
codegen_flags: <defaults>
</compile_context>

<pallas_src>
import jax
import jax.numpy as jnp
from jax.experimental import pallas as pl
from jax.experimental.pallas import tpu as pltpu


# ---------------------------------------------------------------------------
# Tiling policy
# ---------------------------------------------------------------------------
_VMEM_X_BUDGET_BYTES = 8 * 1024 * 1024   # per x buffer (x2 for double-buffering)
_MAX_TB = 1024                           # rows per tile cap
_TK_TILE = 2048                          # K tile (multiple of 128) when K is tiled
_VMEM_LIMIT_BYTES = 48 * 1024 * 1024     # headroom-safe on v7x (64 MiB/TC)


def _round_up(x, m):
    return ((x + m - 1) // m) * m


def _select_tiles(batch, input_dim, itemsize):
    """Pick (TB, TK) so one x tile is <= _VMEM_X_BUDGET_BYTES."""
    # Only tile K when even an 8-row block of the full width would bust the budget.
    if input_dim * itemsize * 8 <= _VMEM_X_BUDGET_BYTES:
        tk = input_dim                      # full width, single K step
    else:
        tk = _TK_TILE                       # multiple of 128 -> lane aligned
    rows_fit = max(8, (_VMEM_X_BUDGET_BYTES // (tk * itemsize)) // 8 * 8)
    tb = min(_MAX_TB, rows_fit, _round_up(batch, 8))
    return tb, tk


# ---------------------------------------------------------------------------
# Kernel
# ---------------------------------------------------------------------------
def _linear_kernel(x_ref, w_ref, b_ref, o_ref, acc_ref):
    # grid = (batch_tiles, k_tiles); K (reduction) is the last grid axis.
    k = pl.program_id(1)

    @pl.when(k == 0)
    def _init():
        acc_ref[...] = jnp.zeros_like(acc_ref)

    # (TB, TK) @ (TK, 1) -> (TB, 1), f32 accumulation.  MXU column
    # under-utilization (N=1) is irrelevant: the kernel is HBM-bound on x.
    acc_ref[...] += jnp.dot(
        x_ref[...], w_ref[...], preferred_element_type=jnp.float32
    )

    @pl.when(k == pl.num_programs(1) - 1)
    def _finalize():
        # bias is a scalar in SMEM -> essentially free read + broadcast add.
        o_ref[...] = (acc_ref[...] + b_ref[0]).astype(o_ref.dtype)


# ---------------------------------------------------------------------------
# Wrapper
# ---------------------------------------------------------------------------
def tile_counter_forward(x, weight, bias):
    """Pallas implementation of TileCounter.forward (y = x @ W^T + b).

    Args:
      x:      (batch, input_dim) float32
      weight: (1, input_dim)     float32   (PyTorch nn.Linear weight layout)
      bias:   (1,)               float32
    Returns:
      (batch, 1) float32
    """
    batch, input_dim = x.shape
    itemsize = jnp.dtype(x.dtype).itemsize

    tb, tk = _select_tiles(batch, input_dim, itemsize)
    batch_pad = _round_up(batch, tb)
    k_pad = _round_up(input_dim, tk)

    w_t = weight.T.reshape(input_dim, 1).astype(x.dtype)   # (D, 1)
    bias_smem = bias.reshape((1,)).astype(jnp.float32)     # SMEM scalar

    # Zero-pad ragged shapes; zeros along K contribute nothing to the dot,
    # padded batch rows are sliced off below.
    if batch_pad != batch or k_pad != input_dim:
        x = jnp.pad(x, ((0, batch_pad - batch), (0, k_pad - input_dim)))
    if k_pad != input_dim:
        w_t = jnp.pad(w_t, ((0, k_pad - input_dim), (0, 0)))

    grid = (batch_pad // tb, k_pad // tk)

    out = pl.pallas_call(
        _linear_kernel,
        out_shape=jax.ShapeDtypeStruct((batch_pad, 1), x.dtype),
        grid_spec=pltpu.PrefetchScalarGridSpec(
            num_scalar_prefetch=0,
            grid=grid,
            in_specs=[
                # x: stream (TB, TK) tiles, pipelined along both grid axes.
                pl.BlockSpec((tb, tk), lambda i, k: (i, k)),
                # weight: (TK, 1) slice per K step, constant across batch tiles.
                pl.BlockSpec((tk, 1), lambda i, k: (k, 0)),
                # bias: whole (1,) array resident in SMEM, no per-step DMA.
                pl.BlockSpec(memory_space=pltpu.MemorySpace.SMEM),
            ],
            # Output block is constant along the K axis -> stays resident as
            # the write target; written once on the last K step.
            out_specs=pl.BlockSpec((tb, 1), lambda i, k: (i, 0)),
            scratch_shapes=[pltpu.VMEM((tb, 1), jnp.float32)],
        ),
        compiler_params=pltpu.CompilerParams(
            # batch axis parallel (v7x megacore sharding), K reduction arbitrary.
            dimension_semantics=("parallel", "arbitrary"),
            vmem_limit_bytes=_VMEM_LIMIT_BYTES,
        ),
    )(x, w_t, bias_smem)

    return out[:batch, :]


# ---------------------------------------------------------------------------
# Self-check
# ---------------------------------------------------------------------------
if __name__ == "__main__":
    key = jax.random.PRNGKey(0)
    k_x, k_w, k_b, k_x2 = jax.random.split(key, 4)

    # Primary small-shape check (matches the module's intent).
    batch = 8
    input_dim = 32

    # Deterministic init mirroring nn.Linear's U(-1/sqrt(in), 1/sqrt(in)).
    bound = 1.0 / jnp.sqrt(jnp.float32(input_dim))
    weight = jax.random.uniform(k_w, (1, input_dim), jnp.float32, -bound, bound)
    bias = jax.random.uniform(k_b, (1,), jnp.float32, -bound, bound)

    x = jax.random.normal(k_x, (batch, input_dim), jnp.float32)

    y = tile_counter_forward(x, weight, bias)
    jax.block_until_ready(y)

    y_ref = x @ weight.T + bias
    assert y.shape == (batch, 1)
    assert jnp.allclose(y, y_ref, atol=1e-5, rtol=1e-5)

    # Secondary check: ragged shapes exercise the padding / tiling path.
    batch2, input_dim2 = 137, 200
    bound2 = 1.0 / jnp.sqrt(jnp.float32(input_dim2))
    w2 = jax.random.uniform(k_w, (1, input_dim2), jnp.float32, -bound2, bound2)
    b2 = jax.random.uniform(k_b, (1,), jnp.float32, -bound2, bound2)
    x2 = jax.random.normal(k_x2, (batch2, input_dim2), jnp.float32)

    y2 = tile_counter_forward(x2, w2, b2)
    jax.block_until_ready(y2)
    y2_ref = x2 @ w2.T + b2
    assert y2.shape == (batch2, 1)
    assert jnp.allclose(y2, y2_ref, atol=1e-4, rtol=1e-4)

    print("KERNEL_OK")
</pallas_src>

<mosaic_0001>
module attributes {stable_mosaic.version = 11 : i64} {
  func.func @_linear_kernel(%arg0: i32, %arg1: i32, %arg2: memref<8x32xf32, #tpu.memory_space<vmem>>, %arg3: memref<32x1xf32, #tpu.memory_space<vmem>>, %arg4: memref<1xf32, #tpu.memory_space<smem>>, %arg5: memref<8x1xf32, #tpu.memory_space<vmem>>, %arg6: memref<8x1xf32, #tpu.memory_space<vmem>>) attributes {dimension_semantics = [#tpu.dimension_semantics<parallel>, #tpu.dimension_semantics<arbitrary>], iteration_bounds = array<i64: 1, 1>, scalar_prefetch = 0 : i64, scratch_operands = 1 : i64, tpu.core_type = #tpu.core_type<tc>, window_params = [{transform_indices = @transform_0, window_bounds = array<i64: 8, 32>}, {transform_indices = @transform_1, window_bounds = array<i64: 32, 1>}, {transform_indices = @transform_2, window_bounds = array<i64: 1>}, {transform_indices = @transform_3, window_bounds = array<i64: 8, 1>}]} {
    %c0_i32 = arith.constant 0 : i32
    %0 = arith.cmpi eq, %arg1, %c0_i32 : i32
    %1 = arith.extui %0 : i1 to i32
    %c0_i32_0 = arith.constant 0 : i32
    %2 = arith.cmpi ne, %1, %c0_i32_0 : i32
    scf.if %2 {
      %cst_10 = arith.constant 0.000000e+00 : f32
      %12 = vector.broadcast %cst_10 : f32 to vector<8x1xf32>
      %c0_11 = arith.constant 0 : index
      %c0_12 = arith.constant 0 : index
      %13 = vector.load %arg6[%c0_11, %c0_12] : memref<8x1xf32, #tpu.memory_space<vmem>>, vector<8x1xf32>
      tpu.vector_store %arg6[%c0_11, %c0_12], %12 {strides = array<i32>} : memref<8x1xf32, #tpu.memory_space<vmem>>, vector<8x1xf32>,
    } else {
    }
    %c0 = arith.constant 0 : index
    %c0_1 = arith.constant 0 : index
    %3 = vector.load %arg6[%c0, %c0_1] : memref<8x1xf32, #tpu.memory_space<vmem>>, vector<8x1xf32>
    %c0_2 = arith.constant 0 : index
    %c0_3 = arith.constant 0 : index
    %4 = vector.load %arg2[%c0_2, %c0_3] : memref<8x32xf32, #tpu.memory_space<vmem>>, vector<8x32xf32>
    %c0_4 = arith.constant 0 : index
    %c0_5 = arith.constant 0 : index
    %5 = vector.load %arg3[%c0_4, %c0_5] : memref<32x1xf32, #tpu.memory_space<vmem>>, vector<32x1xf32>
    %cst = arith.constant dense<0.000000e+00> : vector<8x1xf32>
    %6 = tpu.matmul %4, %5, %cst {dimension_numbers = #tpu.dot_dimension_numbers<[1], [0], [0], [1], [0, 0, 1, 1], [], []>} : vector<8x32xf32>, vector<32x1xf32>, vector<8x1xf32> -> vector<8x1xf32>
    %7 = arith.addf %3, %6 : vector<8x1xf32>
    %c0_6 = arith.constant 0 : index
    %c0_7 = arith.constant 0 : index
    %8 = vector.load %arg6[%c0_6, %c0_7] : memref<8x1xf32, #tpu.memory_space<vmem>>, vector<8x1xf32>
    tpu.vector_store %arg6[%c0_6, %c0_7], %7 {strides = array<i32>} : memref<8x1xf32, #tpu.memory_space<vmem>>, vector<8x1xf32>,
    %c0_i32_8 = arith.constant 0 : i32
    %9 = arith.cmpi eq, %arg1, %c0_i32_8 : i32
    %10 = arith.extui %9 : i1 to i32
    %c0_i32_9 = arith.constant 0 : i32
    %11 = arith.cmpi ne, %10, %c0_i32_9 : i32
    scf.if %11 {
      %c0_10 = arith.constant 0 : index
      %c0_11 = arith.constant 0 : index
      %12 = vector.load %arg6[%c0_10, %c0_11] : memref<8x1xf32, #tpu.memory_space<vmem>>, vector<8x1xf32>
      %c0_12 = arith.constant 0 : index
      %13 = memref.load %arg4[%c0_12] : memref<1xf32, #tpu.memory_space<smem>>
      %14 = vector.broadcast %13 : f32 to vector<8x1xf32>
      %15 = arith.addf %12, %14 : vector<8x1xf32>
      %c0_13 = arith.constant 0 : index
      %c0_14 = arith.constant 0 : index
      %16 = vector.load %arg5[%c0_13, %c0_14] : memref<8x1xf32, #tpu.memory_space<vmem>>, vector<8x1xf32>
      tpu.vector_store %arg5[%c0_13, %c0_14], %15 {strides = array<i32>} : memref<8x1xf32, #tpu.memory_space<vmem>>, vector<8x1xf32>,
    } else {
    }
    return
  }
  func.func @transform_0(%arg0: i32, %arg1: i32) -> (i32, i32) {
    %c0_i32 = arith.constant 0 : i32
    return %arg0, %arg1 : i32, i32
  }
  func.func @transform_1(%arg0: i32, %arg1: i32) -> (i32, i32) {
    %c0_i32 = arith.constant 0 : i32
    %c0_i32_0 = arith.constant 0 : i32
    return %arg1, %c0_i32 : i32, i32
  }
  func.func @transform_2(%arg0: i32, %arg1: i32) -> i32 {
    %c0_i32 = arith.constant 0 : i32
    %c0_i32_0 = arith.constant 0 : i32
    return %c0_i32 : i32
  }
  func.func @transform_3(%arg0: i32, %arg1: i32) -> (i32, i32) {
    %c0_i32 = arith.constant 0 : i32
    %c0_i32_0 = arith.constant 0 : i32
    return %arg0, %c0_i32 : i32, i32
  }
}

</mosaic_0001>

<bundles_post_ra>
// kernel: tpu_custom_call.1
= control target key start
LH: loop header
LB: loop body
LE: loop exit
PB: predicated region body
PF: predicated region fallthrough
CT: control target
= control target key end

     0   :  { %vm19_vm0 = vcmask 7168   ;;  %v142_v0 = vmov 0.0|0.0   ;;  %v143_v4 = vmov 0.0   ;;  %vm144_vm1 = vmmov 0   ;;  %s189_s1 = inlined_call_operand.vmem [shape: f32[32,1], index: 1, kind: input, shape index: {}]   ;;  %s190_s0 = inlined_call_operand.vmem [shape: f32[8,32], index: 0, kind: input, shape index: {}]   ;;  %s191_s2 = inlined_call_operand.<no memory space> [shape: f32[1], index: 2, kind: input, shape index: {}]   ;;  %s192_s3 = inlined_call_operand.vmem [shape: f32[8,1], index: 3, kind: output, shape index: {}]  }
   0x1   :  { %133 = vmatprep.subr.bf16.mxu0 %v142_v0  ;;  %v23_v1 = vld [vmem:[%s189_s1] sm:$0xff]  ;;  %v24_v2 = vld [vmem:[%s189_s1 + $0x8] sm:$0xff]  ;;  %v25_v3 = vld [vmem:[%s189_s1 + $0x10] sm:$0xff]  ;;  %20 = vst.msk [vmem:[#allocation2] sm:$0xff] %vm19_vm0, %v143_v4  ;;  %130 = vmatprep.mubr.msk.f32.mxu0 %vm144_vm1, %v143_v4  ;;  %vm27_vm2 = vcmask 261120   ;;  %v109_v13 = vstv %s191_s2 }
   0x2   :  { %v134_v5 = vpack.c.bf16 %v24_v2, %v23_v1  ;;  %v26_v6 = vld [vmem:[%s189_s1 + $0x18] sm:$0xff]  ;;  %v22_v8 = vld [vmem:[%s190_s0] sm:$0xff] }
   0x3   :  { %v137_v7 = vpack.c.bf16 %v26_v6, %v25_v3 }
   0x4   :  { %135 = vmatpush3.bf16.msra.mxu0 %v134_v5 }
   0x5   :  { %136 = vmatprep.subr.bf16.mxu0 %v142_v0 }
   0x8   :  { %138 = vmatpush3.bf16.msra.mxu0 %v137_v7  ;;  %v21_v9 = vld [vmem:[#allocation2] sm:$0xff] }
   0xb   :  { %131 = vmatmul.mubr.msk.f32.vlgmr.msra.gmra.mrb[0].mxu0 %vm27_vm2, %v22_v8 }
  0xde   :  { %v97_v10 = vpop.f32.mrb[0].mxu0 }
  0xdf   :  { %v101_v11 = vadd.f32 %v97_v10, %v21_v9  ;;  %v132_v12 = vpop.f32.mrb[1].mxu0 }
  0xe1   :  { %103 = vst.msk [vmem:[#allocation2] sm:$0xff] %vm19_vm0, %v101_v11 }
  0xe8   :  { %v107_v14 = vld [vmem:[#allocation2] sm:$0xff] }
  0xe9   :  { %v110_v15 = vadd.f32 %v109_v13, %v107_v14 }
  0xeb   :  { %111 = vst.msk [vmem:[%s192_s3] sm:$0xff] %vm19_vm0, %v110_v15 }

</bundles_post_ra>
